<compile_context>
chip_gen: v5e
topology: v5e:2x2
jax: 0.10.0
libtpu: 0.0.40
codegen_flags: <defaults>
</compile_context>

<pallas_src>
import functools

import jax
import jax.numpy as jnp
from jax.experimental import pallas as pl
from jax.experimental.pallas import tpu as pltpu


def _gelu_openai(x):
    # OpenAI / DALL-E tanh-approx gelu, matching the PyTorch reference exactly.
    return 0.5 * x * (1.0 + jnp.tanh(0.7978845608028654 * x * (1.0 + 0.044715 * x * x)))


# --------------------------------------------------------------------------- #
# Kernels
# --------------------------------------------------------------------------- #

def mlp_kernel_resident(x_ref, w1_ref, b1_ref, w2_ref, b2_ref, o_ref):
    """1-D grid over row tiles; W1/W2 stay VMEM-resident (constant index maps).

    Single MXU-bound pass over x: no weight re-streaming, no accumulator RMW,
    no per-FFN-step pipeline overhead.
    """
    h = jnp.dot(x_ref[...], w1_ref[...], preferred_element_type=jnp.float32)
    h = _gelu_openai(h + b1_ref[...].astype(jnp.float32))      # gelu in f32 (VPU + EUP)
    out = jnp.dot(h.astype(w2_ref.dtype), w2_ref[...],
                  preferred_element_type=jnp.float32)
    o_ref[...] = (out + b2_ref[...].astype(jnp.float32)).astype(o_ref.dtype)


def mlp_kernel_streamed(x_ref, w1_ref, b1_ref, w2_ref, b2_ref, o_ref, acc_ref):
    """2-D grid (row tile i, FFN tile j). Axis 1 streams the 4H dim (reduction).

    Partial products of the second matmul accumulate into acc_ref (f32 VMEM);
    b2 is fused into the finalize (no tm x H broadcast/store per row tile).
    """
    j = pl.program_id(1)

    @pl.when(j == 0)
    def _init():
        acc_ref[...] = jnp.zeros_like(acc_ref)

    # First matmul: operands stay in their input dtype (bf16 stays bf16 on the
    # MXU); accumulation in f32 via preferred_element_type.
    h = jnp.dot(x_ref[...], w1_ref[...], preferred_element_type=jnp.float32)
    h = _gelu_openai(h + b1_ref[...].astype(jnp.float32))

    # Second matmul: cast the gelu output back to the weight dtype for full MXU
    # rate, accumulate the FFN partial product into the f32 scratch.
    acc_ref[...] += jnp.dot(h.astype(w2_ref.dtype), w2_ref[...],
                            preferred_element_type=jnp.float32)

    @pl.when(j == pl.num_programs(1) - 1)
    def _finish():
        o_ref[...] = (acc_ref[...] + b2_ref[...].astype(jnp.float32)).astype(o_ref.dtype)


# --------------------------------------------------------------------------- #
# Tiling / chip-budget helpers (all trace-time Python)
# --------------------------------------------------------------------------- #

def _round_up(x, m):
    return ((x + m - 1) // m) * m


def _pick_ffn_tile(f, desired):
    """Largest multiple of 128 that divides f and is <= desired (else f itself)."""
    if f <= desired:
        return f
    t = (desired // 128) * 128
    while t >= 128:
        if f % t == 0:
            return t
        t -= 128
    return f


def _chip_info():
    """(device_kind lowercase, physical per-core VMEM bytes) with safe fallbacks."""
    try:
        kind = jax.devices()[0].device_kind.lower()
    except Exception:
        kind = ""
    try:
        vmem = int(pltpu.get_tpu_info().vmem_capacity_bytes)
    except Exception:
        vmem = (64 << 20) if "v7" in kind else (128 << 20)
    return kind, vmem


def _select_tiles(M, H, F, x_it, w_it, o_it, phys_vmem, kind,
                  tm_req, tn_req, force_streaming):
    """Pick (tm, tn, resident, vmem_estimate) for the given shapes / chip."""
    budget = int(0.70 * phys_vmem)   # headroom for compiler scratch / semaphores

    # Row-tile target: per-chip compute/HBM break-even (weight traffic ~ 1/tm).
    if tm_req is not None:
        tm = tm_req
    elif "v7" in kind:
        tm = 512        # break-even ~310 flops/byte; 64 MiB per-core VMEM
    elif "v6" in kind:
        tm = 1024       # break-even ~650 flops/byte; 128 MiB VMEM
    else:
        tm = 256        # v5e / unknown
    tm = min(tm, M)
    if tm < M:
        tm = max(8, (tm // 8) * 8)

    # v7x megacore: guarantee >=2 row tiles so both TensorCores get work.
    if "v7" in kind and M > 8:
        half = _round_up(-(-M // 2), 8)
        if half < M:
            tm = min(tm, half)

    weights_bytes = (2 * H * F + F + H) * w_it
    resident = (not force_streaming) and (weights_bytes <= budget // 3)

    tn = F if resident else _pick_ffn_tile(F, tn_req if tn_req is not None else 512)

    def est(tm_, tn_):
        if resident:
            return (2 * tm_ * H * (x_it + o_it)        # x + out (double-buffered)
                    + 2 * weights_bytes                # W1/b1/W2/b2 (conservative x2)
                    + tm_ * F * (4 + w_it)             # gelu intermediate + its cast
                    + tm_ * H * 4)                     # f32 result before output cast
        return (2 * tm_ * H * (x_it + o_it)            # x + out (double-buffered)
                + 2 * (H * tn_ + tn_ + tn_ * H + H) * w_it   # streamed W1/b1/W2/b2
                + tm_ * H * 4                          # f32 accumulator
                + tm_ * tn_ * (4 + w_it))              # gelu intermediate + its cast

    # Shrink tn first (preserves weight-traffic amortization), then tm.
    if not resident:
        while est(tm, tn) > budget and tn > 128:
            new_tn = _pick_ffn_tile(F, max(128, tn // 2))
            if new_tn >= tn:
                break
            tn = new_tn
    while est(tm, tn) > budget and tm > 8:
        tm = max(8, ((tm // 2) // 8) * 8)

    if resident and est(tm, tn) > budget:
        # Weights don't leave room even for a minimal row tile -> stream instead.
        return _select_tiles(M, H, F, x_it, w_it, o_it, phys_vmem, kind,
                             tm_req, tn_req, True)
    return tm, tn, resident, est(tm, tn)


# --------------------------------------------------------------------------- #
# Wrapper
# --------------------------------------------------------------------------- #

@functools.partial(
    jax.jit,
    static_argnames=("tm", "tn", "force_streaming", "cast_inputs_to_bf16"))
def mlp_forward(x, w1, b1, w2, b2, *, tm=None, tn=None,
                force_streaming=False, cast_inputs_to_bf16=False):
    """x: [B, S, H] -> [B, S, H]. Weights: w1 [H, 4H], b1 [4H], w2 [4H, H], b2 [H]."""
    B, S, H = x.shape
    F = w1.shape[1]                      # 4H
    M = B * S
    out_dtype = x.dtype

    x2 = x.reshape(M, H)
    if cast_inputs_to_bf16 and x2.dtype == jnp.float32:
        # MXU is bf16-native on all generations; f32 accumulation is kept via
        # preferred_element_type inside the kernel. Opt-in (changes rounding).
        x2 = x2.astype(jnp.bfloat16)
        w1 = w1.astype(jnp.bfloat16)
        w2 = w2.astype(jnp.bfloat16)
    b1_2 = b1.reshape(1, F)
    b2_2 = b2.reshape(1, H)

    x_it = jnp.dtype(x2.dtype).itemsize
    w_it = jnp.dtype(w1.dtype).itemsize
    o_it = jnp.dtype(out_dtype).itemsize

    kind, phys_vmem = _chip_info()
    tm_eff, tn_eff, resident, vmem_est = _select_tiles(
        M, H, F, x_it, w_it, o_it, phys_vmem, kind, tm, tn, force_streaming)

    # Ragged last row tile handled by Pallas (no jnp.pad copy of x); rows are
    # independent and out-of-bounds output rows are simply not written back.
    grid_i = pl.cdiv(M, tm_eff)

    weight_passes = 1 if resident else int(grid_i)
    cost = pl.CostEstimate(
        flops=4 * M * H * F,                                   # two matmuls
        transcendentals=M * F,                                 # tanh per FFN element
        bytes_accessed=int(M * H * (x_it + o_it)
                           + weight_passes * (2 * H * F + F + H) * w_it),
    )

    # Always set the scoped-VMEM limit explicitly; clamp below the physical
    # per-core capacity (64 MiB on v7x, 128 MiB on v5e/v6e).
    vmem_limit = int(min(max(32 << 20, 1.25 * vmem_est + (2 << 20)),
                         0.90 * phys_vmem))

    if resident:
        cp = pltpu.CompilerParams(dimension_semantics=("parallel",),
                                  vmem_limit_bytes=vmem_limit)
        out2 = pl.pallas_call(
            mlp_kernel_resident,
            out_shape=jax.ShapeDtypeStruct((M, H), out_dtype),
            grid_spec=pltpu.PrefetchScalarGridSpec(
                num_scalar_prefetch=0,
                grid=(grid_i,),
                in_specs=[
                    pl.BlockSpec((tm_eff, H), lambda i: (i, 0)),   # x row tile
                    pl.BlockSpec((H, F), lambda i: (0, 0)),        # W1 resident
                    pl.BlockSpec((1, F), lambda i: (0, 0)),        # b1 resident
                    pl.BlockSpec((F, H), lambda i: (0, 0)),        # W2 resident
                    pl.BlockSpec((1, H), lambda i: (0, 0)),        # b2 resident
                ],
                out_specs=pl.BlockSpec((tm_eff, H), lambda i: (i, 0)),
            ),
            compiler_params=cp,
            cost_estimate=cost,
        )(x2, w1, b1_2, w2, b2_2)
    else:
        cp = pltpu.CompilerParams(dimension_semantics=("parallel", "arbitrary"),
                                  vmem_limit_bytes=vmem_limit)
        # TODO(synk): pipeline_mode=pl.Buffered(3) on W1/W2 only if a profile
        # shows exposed DMA at row-tile boundaries (watch the v7x VMEM budget).
        out2 = pl.pallas_call(
            mlp_kernel_streamed,
            out_shape=jax.ShapeDtypeStruct((M, H), out_dtype),
            grid_spec=pltpu.PrefetchScalarGridSpec(
                num_scalar_prefetch=0,
                grid=(grid_i, F // tn_eff),
                in_specs=[
                    pl.BlockSpec((tm_eff, H), lambda i, j: (i, 0)),   # x row tile (held across j)
                    pl.BlockSpec((H, tn_eff), lambda i, j: (0, j)),   # W1 FFN slice (streamed)
                    pl.BlockSpec((1, tn_eff), lambda i, j: (0, j)),   # b1 FFN slice
                    pl.BlockSpec((tn_eff, H), lambda i, j: (j, 0)),   # W2 FFN slice (streamed)
                    pl.BlockSpec((1, H), lambda i, j: (0, 0)),        # b2
                ],
                out_specs=pl.BlockSpec((tm_eff, H), lambda i, j: (i, 0)),
                scratch_shapes=[pltpu.VMEM((tm_eff, H), jnp.float32)],
            ),
            compiler_params=cp,
            cost_estimate=cost,
        )(x2, w1, b1_2, w2, b2_2)

    return out2.reshape(B, S, H)


# --------------------------------------------------------------------------- #
# Params / reference
# --------------------------------------------------------------------------- #

def init_mlp_params(key, hidden_size, dtype=jnp.float32):
    """Deterministic init mimicking torch.nn.Linear default (uniform +/- 1/sqrt(fan_in))."""
    k1, k2, k3, k4 = jax.random.split(key, 4)
    h, h4 = hidden_size, 4 * hidden_size
    lim1 = 1.0 / (h ** 0.5)
    lim2 = 1.0 / (h4 ** 0.5)
    # Stored as [in, out] (already transposed vs torch's [out, in]) so the kernel
    # can do x @ W directly.
    w1 = jax.random.uniform(k1, (h, h4), dtype, minval=-lim1, maxval=lim1)
    b1 = jax.random.uniform(k2, (h4,), dtype, minval=-lim1, maxval=lim1)
    w2 = jax.random.uniform(k3, (h4, h), dtype, minval=-lim2, maxval=lim2)
    b2 = jax.random.uniform(k4, (h,), dtype, minval=-lim2, maxval=lim2)
    return w1, b1, w2, b2


def mlp_reference(x, w1, b1, w2, b2):
    """Pure-JAX reference for correctness checking."""
    h = jnp.einsum("bsh,hf->bsf", x, w1) + b1
    h = _gelu_openai(h)
    return jnp.einsum("bsf,fh->bsh", h, w2) + b2


if __name__ == "__main__":
    key = jax.random.PRNGKey(0)

    # --- Test 1: required small shape (B=2, S=8, H=32), f32, resident path. ---
    B, S, H = 2, 8, 32
    kx, kp, key = jax.random.split(key, 3)
    x = jax.random.normal(kx, (B, S, H), jnp.float32)
    w1, b1, w2, b2 = init_mlp_params(kp, H)
    out = jax.block_until_ready(mlp_forward(x, w1, b1, w2, b2))
    ref = mlp_reference(x, w1, b1, w2, b2)
    assert out.shape == (B, S, H), out.shape
    assert jnp.allclose(out, ref, atol=1e-4, rtol=1e-4), "f32 small-shape mismatch"

    # --- Test 2: H=128, ragged M (no padding copy), forced streamed 2-D grid. ---
    B, S, H = 2, 50, 128
    kx, kp, key = jax.random.split(key, 3)
    x = jax.random.normal(kx, (B, S, H), jnp.float32)
    w1, b1, w2, b2 = init_mlp_params(kp, H)
    out = jax.block_until_ready(
        mlp_forward(x, w1, b1, w2, b2, tm=64, tn=256, force_streaming=True))
    ref = mlp_reference(x, w1, b1, w2, b2)
    assert out.shape == (B, S, H), out.shape
    assert jnp.allclose(out, ref, atol=2e-3, rtol=2e-3), "f32 streamed/ragged mismatch"

    # --- Test 3: bf16 operands (MXU-native dtype) with f32 accumulation. ---
    B, S, H = 2, 64, 128
    kx, kp, key = jax.random.split(key, 3)
    x = jax.random.normal(kx, (B, S, H), jnp.float32).astype(jnp.bfloat16)
    w1, b1, w2, b2 = init_mlp_params(kp, H, dtype=jnp.bfloat16)
    out = jax.block_until_ready(mlp_forward(x, w1, b1, w2, b2))
    ref = mlp_reference(x.astype(jnp.float32), w1.astype(jnp.float32),
                        b1.astype(jnp.float32), w2.astype(jnp.float32),
                        b2.astype(jnp.float32))
    assert out.shape == (B, S, H), out.shape
    assert jnp.allclose(out.astype(jnp.float32), ref, atol=6e-2, rtol=6e-2), "bf16 mismatch"

    # --- Test 4: f32 inputs with opt-in bf16 MXU compute (mixed precision). ---
    B, S, H = 2, 32, 128
    kx, kp, key = jax.random.split(key, 3)
    x = jax.random.normal(kx, (B, S, H), jnp.float32)
    w1, b1, w2, b2 = init_mlp_params(kp, H)
    out = jax.block_until_ready(
        mlp_forward(x, w1, b1, w2, b2, cast_inputs_to_bf16=True))
    ref = mlp_reference(x, w1, b1, w2, b2)
    assert out.shape == (B, S, H), out.shape
    assert out.dtype == x.dtype, out.dtype
    assert jnp.allclose(out, ref, atol=6e-2, rtol=6e-2), "bf16-cast mismatch"

    print("KERNEL_OK")
</pallas_src>

<mosaic_0001>
module attributes {stable_mosaic.version = 11 : i64} {
  func.func @mlp_kernel_resident(%arg0: i32, %arg1: memref<16x32xf32, #tpu.memory_space<vmem>>, %arg2: memref<32x128xf32, #tpu.memory_space<vmem>>, %arg3: memref<1x128xf32, #tpu.memory_space<vmem>>, %arg4: memref<128x32xf32, #tpu.memory_space<vmem>>, %arg5: memref<1x32xf32, #tpu.memory_space<vmem>>, %arg6: memref<16x32xf32, #tpu.memory_space<vmem>>) attributes {dimension_semantics = [#tpu.dimension_semantics<parallel>], iteration_bounds = array<i64: 1>, scalar_prefetch = 0 : i64, scratch_operands = 0 : i64, tpu.core_type = #tpu.core_type<tc>, window_params = [{transform_indices = @transform_0, window_bounds = array<i64: 16, 32>}, {pipeline_mode = #tpu.pipeline_mode<synchronous>, transform_indices = @transform_1, window_bounds = array<i64: 32, 128>}, {pipeline_mode = #tpu.pipeline_mode<synchronous>, transform_indices = @transform_2, window_bounds = array<i64: 1, 128>}, {pipeline_mode = #tpu.pipeline_mode<synchronous>, transform_indices = @transform_3, window_bounds = array<i64: 128, 32>}, {pipeline_mode = #tpu.pipeline_mode<synchronous>, transform_indices = @transform_4, window_bounds = array<i64: 1, 32>}, {transform_indices = @transform_5, window_bounds = array<i64: 16, 32>}]} {
    %c0 = arith.constant 0 : index
    %c0_0 = arith.constant 0 : index
    %0 = vector.load %arg1[%c0, %c0_0] : memref<16x32xf32, #tpu.memory_space<vmem>>, vector<16x32xf32>
    %c0_1 = arith.constant 0 : index
    %c0_2 = arith.constant 0 : index
    %1 = vector.load %arg2[%c0_1, %c0_2] : memref<32x128xf32, #tpu.memory_space<vmem>>, vector<32x128xf32>
    %cst = arith.constant dense<0.000000e+00> : vector<16x128xf32>
    %2 = tpu.matmul %0, %1, %cst {dimension_numbers = #tpu.dot_dimension_numbers<[1], [0], [0], [1], [0, 0, 1, 1], [], []>} : vector<16x32xf32>, vector<32x128xf32>, vector<16x128xf32> -> vector<16x128xf32>
    %c0_3 = arith.constant 0 : index
    %c0_4 = arith.constant 0 : index
    %3 = vector.load %arg3[%c0_3, %c0_4] : memref<1x128xf32, #tpu.memory_space<vmem>>, vector<1x128xf32>
    %4 = vector.broadcast %3 : vector<1x128xf32> to vector<16x128xf32>
    %5 = arith.addf %2, %4 : vector<16x128xf32>
    %cst_5 = arith.constant 5.000000e-01 : f32
    %6 = vector.broadcast %cst_5 : f32 to vector<16x128xf32>
    %7 = arith.mulf %6, %5 : vector<16x128xf32>
    %cst_6 = arith.constant 0.797884583 : f32
    %8 = vector.broadcast %cst_6 : f32 to vector<16x128xf32>
    %9 = arith.mulf %8, %5 : vector<16x128xf32>
    %cst_7 = arith.constant 4.471500e-02 : f32
    %10 = vector.broadcast %cst_7 : f32 to vector<16x128xf32>
    %11 = arith.mulf %10, %5 : vector<16x128xf32>
    %12 = arith.mulf %11, %5 : vector<16x128xf32>
    %cst_8 = arith.constant 1.000000e+00 : f32
    %13 = vector.broadcast %cst_8 : f32 to vector<16x128xf32>
    %14 = arith.addf %13, %12 : vector<16x128xf32>
    %15 = arith.mulf %9, %14 : vector<16x128xf32>
    %16 = math.tanh %15 : vector<16x128xf32>
    %cst_9 = arith.constant 1.000000e+00 : f32
    %17 = vector.broadcast %cst_9 : f32 to vector<16x128xf32>
    %18 = arith.addf %17, %16 : vector<16x128xf32>
    %19 = arith.mulf %7, %18 : vector<16x128xf32>
    %c0_10 = arith.constant 0 : index
    %c0_11 = arith.constant 0 : index
    %20 = vector.load %arg4[%c0_10, %c0_11] : memref<128x32xf32, #tpu.memory_space<vmem>>, vector<128x32xf32>
    %cst_12 = arith.constant dense<0.000000e+00> : vector<16x32xf32>
    %21 = tpu.matmul %19, %20, %cst_12 {dimension_numbers = #tpu.dot_dimension_numbers<[1], [0], [0], [1], [0, 0, 1, 1], [], []>} : vector<16x128xf32>, vector<128x32xf32>, vector<16x32xf32> -> vector<16x32xf32>
    %c0_13 = arith.constant 0 : index
    %c0_14 = arith.constant 0 : index
    %22 = vector.load %arg5[%c0_13, %c0_14] : memref<1x32xf32, #tpu.memory_space<vmem>>, vector<1x32xf32>
    %23 = vector.broadcast %22 : vector<1x32xf32> to vector<16x32xf32>
    %24 = arith.addf %21, %23 : vector<16x32xf32>
    %c0_15 = arith.constant 0 : index
    %c0_16 = arith.constant 0 : index
    %25 = vector.load %arg6[%c0_15, %c0_16] : memref<16x32xf32, #tpu.memory_space<vmem>>, vector<16x32xf32>
    tpu.vector_store %arg6[%c0_15, %c0_16], %24 {strides = array<i32>} : memref<16x32xf32, #tpu.memory_space<vmem>>, vector<16x32xf32>,
    return
  }
  func.func @transform_0(%arg0: i32) -> (i32, i32) {
    %c0_i32 = arith.constant 0 : i32
    %c0_i32_0 = arith.constant 0 : i32
    return %arg0, %c0_i32 : i32, i32
  }
  func.func @transform_1(%arg0: i32) -> (i32, i32) {
    %c0_i32 = arith.constant 0 : i32
    %c0_i32_0 = arith.constant 0 : i32
    %c0_i32_1 = arith.constant 0 : i32
    return %c0_i32, %c0_i32_0 : i32, i32
  }
  func.func @transform_2(%arg0: i32) -> (i32, i32) {
    %c0_i32 = arith.constant 0 : i32
    %c0_i32_0 = arith.constant 0 : i32
    %c0_i32_1 = arith.constant 0 : i32
    return %c0_i32, %c0_i32_0 : i32, i32
  }
  func.func @transform_3(%arg0: i32) -> (i32, i32) {
    %c0_i32 = arith.constant 0 : i32
    %c0_i32_0 = arith.constant 0 : i32
    %c0_i32_1 = arith.constant 0 : i32
    return %c0_i32, %c0_i32_0 : i32, i32
  }
  func.func @transform_4(%arg0: i32) -> (i32, i32) {
    %c0_i32 = arith.constant 0 : i32
    %c0_i32_0 = arith.constant 0 : i32
    %c0_i32_1 = arith.constant 0 : i32
    return %c0_i32, %c0_i32_0 : i32, i32
  }
  func.func @transform_5(%arg0: i32) -> (i32, i32) {
    %c0_i32 = arith.constant 0 : i32
    %c0_i32_0 = arith.constant 0 : i32
    return %arg0, %c0_i32 : i32, i32
  }
}

</mosaic_0001>

<bundles_post_ra>
// kernel: mlp_forward.1
= control target key start
LH: loop header
LB: loop body
LE: loop exit
PB: predicated region body
PF: predicated region fallthrough
CT: control target
= control target key end

     0   :  { %s307_s0 = inlined_call_operand.vmem [shape: f32[16,32], index: 0, kind: input, shape index: {}]   ;;  %s308_s1 = inlined_call_operand.vmem [shape: f32[32,128], index: 1, kind: input, shape index: {}]   ;;  %s309_s2 = inlined_call_operand.vmem [shape: f32[1,128], index: 2, kind: input, shape index: {}]   ;;  %s310_s3 = inlined_call_operand.vmem [shape: f32[128,32], index: 3, kind: input, shape index: {}]   ;;  %s311_s4 = inlined_call_operand.vmem [shape: f32[1,32], index: 4, kind: input, shape index: {}]   ;;  %s312_s5 = inlined_call_operand.hbm [shape: f32[16,32], index: 5, kind: output, shape index: {}]  }
   0x1   :  { %v26_v0 = vld [vmem:[%s308_s1 + $0x18] sm:$0xff]  ;;  %v25_v1 = vld [vmem:[%s308_s1 + $0x10] sm:$0xff]  ;;  %v24_v2 = vld [vmem:[%s308_s1 + $0x8] sm:$0xff] }
   0x2   :  { %50 = vmatpush.msra.mxu0 %v26_v0  ;;  %v94_v3 = vld [vmem:[%s310_s3 + $0x78] sm:$0xff]  ;;  %v93_v4 = vld [vmem:[%s310_s3 + $0x70] sm:$0xff]  ;;  %v23_v5 = vld [vmem:[%s308_s1] sm:$0xff] }
   0x3   :  { %99 = vmatpush.msra.mxu1 %v94_v3  ;;  %v92_v6 = vld [vmem:[%s310_s3 + $0x68] sm:$0xff]  ;;  %144 = vmatpush.msra.mxu2 %v94_v3 }
   0x4   :  { %51 = vmatpush.msra.mxu0 %v25_v1 }
   0x5   :  { %10 = vsyncpa [#allocation3], 0  ;;  %v21_v7 = vld [vmem:[%s307_s0] sm:$0xff]  ;;  %vm31_vm0 = vcmask 261120   ;;  %100 = vmatpush.msra.mxu1 %v93_v4  ;;  %145 = vmatpush.msra.mxu2 %v93_v4  ;;  %v90_v9 = vld [vmem:[%s310_s3 + $0x58] sm:$0xff]  ;;  %s195_s11 = smov [#allocation2]  }
   0x6   :  { %52 = vmatpush.msra.mxu0 %v24_v2  ;;  %v91_v8 = vld [vmem:[%s310_s3 + $0x60] sm:$0xff]  ;;  %v22_v10 = vld [vmem:[%s307_s0 + $0x8] sm:$0xff]  ;;  %v89_v11 = vld [vmem:[%s310_s3 + $0x50] sm:$0xff]  ;;  %s128_s12 = sshll.u32 %s195_s11, 4  ;;  %s130_s15 = sshll.u32 %s312_s5, 4  ;;  %s129_s12 = int_to_ptr.vmem [resolvable:$true] %s128_s12  ;;  %s131_s15 = int_to_ptr.hbm [resolvable:$true] %s130_s15 }
   0x7   :  { %101 = vmatpush.msra.mxu1 %v92_v6  ;;  %146 = vmatpush.msra.mxu2 %v92_v6  ;;  %v88_v12 = vld [vmem:[%s310_s3 + $0x48] sm:$0xff]  ;;  %v87_v13 = vld [vmem:[%s310_s3 + $0x40] sm:$0xff]  ;;  %v86_v14 = vld [vmem:[%s310_s3 + $0x38] sm:$0xff]  ;;  %s196_s16 = smov 128   ;;  %s197_s17 = smov 8  }
   0x8   :  { %53 = vmatpush.msra.mxu0 %v23_v5  ;;  %v85_v15 = vld [vmem:[%s310_s3 + $0x30] sm:$0xff]  ;;  %v84_v16 = vld [vmem:[%s310_s3 + $0x28] sm:$0xff]  ;;  %v83_v17 = vld [vmem:[%s310_s3 + $0x20] sm:$0xff] }
   0x9   :  { %142 = vmatmul.msk.f32.vlgmr.msra.gmra.mxu0 %vm31_vm0, %v21_v7  ;;  %102 = vmatpush.msra.mxu1 %v91_v8  ;;  %v82_v18 = vld [vmem:[%s310_s3 + $0x18] sm:$0xff]  ;;  %v81_v19 = vld [vmem:[%s310_s3 + $0x10] sm:$0xff]  ;;  %v80_v20 = vld [vmem:[%s310_s3 + $0x8] sm:$0xff] }
   0xa   :  { %147 = vmatpush.msra.mxu2 %v91_v8  ;;  %v79_v21 = vld [vmem:[%s310_s3] sm:$0xff] }
   0xb   :  { %103 = vmatpush.msra.mxu1 %v90_v9  ;;  %v163_v22 = vld [vmem:[%s309_s2] ss:$0 sm:$0xff] }
   0xc   :  { %148 = vmatpush.msra.mxu2 %v90_v9  ;;  %v164_v45 = vld [vmem:[%s311_s4] ss:$0 sm:$0xff] }
   0xd   :  { %104 = vmatpush.msra.mxu1 %v89_v11 }
   0xe   :  { %149 = vmatpush.msra.mxu2 %v89_v11 }
   0xf   :  { %105 = vmatpush.msra.mxu1 %v88_v12 }
  0x10   :  { %150 = vmatpush.msra.mxu2 %v88_v12 }
  0x11   :  { %143 = vmatmul.msk.f32.gmra.mxu0 %vm31_vm0, %v22_v10  ;;  %106 = vmatpush.msra.mxu1 %v87_v13 }
  0x12   :  { %151 = vmatpush.msra.mxu2 %v87_v13 }
  0x13   :  { %107 = vmatpush.msra.mxu1 %v86_v14 }
  0x14   :  { %152 = vmatpush.msra.mxu2 %v86_v14 }
  0x15   :  { %108 = vmatpush.msra.mxu1 %v85_v15 }
  0x16   :  { %153 = vmatpush.msra.mxu2 %v85_v15 }
  0x17   :  { %109 = vmatpush.msra.mxu1 %v84_v16 }
  0x18   :  { %154 = vmatpush.msra.mxu2 %v84_v16 }
  0x19   :  { %110 = vmatpush.msra.mxu1 %v83_v17 }
  0x1a   :  { %155 = vmatpush.msra.mxu2 %v83_v17 }
  0x1b   :  { %111 = vmatpush.msra.mxu1 %v82_v18 }
  0x1c   :  { %156 = vmatpush.msra.mxu2 %v82_v18 }
  0x1d   :  { %112 = vmatpush.msra.mxu1 %v81_v19 }
  0x1e   :  { %157 = vmatpush.msra.mxu2 %v81_v19 }
  0x1f   :  { %113 = vmatpush.msra.mxu1 %v80_v20 }
  0x20   :  { %158 = vmatpush.msra.mxu2 %v80_v20 }
  0x21   :  { %114 = vmatpush.msra.mxu1 %v79_v21 }
  0x22   :  { %159 = vmatpush.msra.mxu2 %v79_v21 }
  0x86   :  { %v55_v23 = vpop.f32.mrf.mxu0 }
  0x87   :  { %v56_v24 = vadd.f32 %v163_v22, %v55_v23 }
  0x89   :  { %v65_v25 = vmul.f32 0.044715, %v56_v24  ;;  %v63_v27 = vmul.f32 0.7978846, %v56_v24  ;;  %v61_v38 = vmul.f32 0.5, %v56_v24 }
  0x8b   :  { %v67_v26 = vmul.f32 %v65_v25, %v56_v24 }
  0x8d   :  { %v69_v28 = vadd.f32 1.0, %v67_v26 }
  0x8e   :  { %v58_v29 = vpop.f32.mrf.mxu0 }
  0x8f   :  { %v59_v30 = vadd.f32 %v163_v22, %v58_v29  ;;  %v71_v31 = vmul.f32 %v69_v28, %v63_v27 }
  0x91   :  { %v66_v32 = vmul.f32 0.044715, %v59_v30  ;;  %165 = vtanh.f32 %v71_v31  ;;  %v64_v34 = vmul.f32 0.7978846, %v59_v30  ;;  %v62_v42 = vmul.f32 0.5, %v59_v30 }
  0x93   :  { %v68_v33 = vmul.f32 %v66_v32, %v59_v30 }
  0x95   :  { %v70_v35 = vadd.f32 1.0, %v68_v33 }
  0x97   :  { %v166_v36 = vpop.eup %165  ;;  %v72_v37 = vmul.f32 %v70_v35, %v64_v34 }
  0x98   :  { %v75_v39 = vadd.f32 1.0, %v166_v36 }
  0x99   :  { %167 = vtanh.f32 %v72_v37 }
  0x9a   :  { %v77_v40 = vmul.f32 %v75_v39, %v61_v38 }
  0x9c   :  { %115 = vmatmul.f32.vlgmr.msra.gmra.mxu1 %v77_v40 }
  0x9f   :  { %v168_v41 = vpop.eup %167 }
  0xa0   :  { %v76_v43 = vadd.f32 1.0, %v168_v41 }
  0xa2   :  { %v78_v44 = vmul.f32 %v76_v43, %v62_v42 }
  0xa4   :  { %118 = vmatmul.f32.vlgmr.msra.gmra.mxu2 %v78_v44 }
 0x119   :  { %v116_v46 = vpop.f32.mrf.mxu1 }
 0x11a   :  { %v117_v47 = vadd.f32 %v164_v45, %v116_v46 }
 0x11c   :  { %122 = vst.msk [vmem:[#allocation2] sm:$0xff] %vm31_vm0, %v117_v47 }
 0x127   :  { %v119_v48 = vpop.f32.mrf.mxu2 }
 0x128   :  { %v120_v49 = vadd.f32 %v164_v45, %v119_v48 }
 0x12a   :  { %123 = vst.msk [vmem:[#allocation2 + $0x8] sm:$0xff] %vm31_vm0, %v120_v49 }
 0x12b   :  { %136 = dma.vmem_to_hbm [thread:$0]  %s129_s12, 256, %s131_s15, [#allocation3], %s196_s16, %s196_s16, %s197_s17  }
 0x12c   :  { %193 = dma.done.wait [#allocation3], 256  }
 0x12d   :  { %194 = vsyncadd [#allocation3], 4294967040 }
 0x12e   :  { %141 = vsyncpa [#allocation3], 1 }

</bundles_post_ra>
